<compile_context>
chip_gen: v5e
topology: v5e:2x2
jax: 0.10.0
libtpu: 0.0.40
codegen_flags: <defaults>
</compile_context>

<pallas_src>
import math

import jax
import jax.numpy as jnp
from jax import lax
from jax.experimental import pallas as pl
from jax.experimental.pallas import tpu as pltpu

D_MODEL = 32
NHEAD = 4
assert D_MODEL % NHEAD == 0, "head-column masking requires D_MODEL % NHEAD == 0"
assert (2 * D_MODEL) % 8 == 0 and D_MODEL % 8 == 0
HEAD_DIM = D_MODEL // NHEAD
LN_EPS = 1e-5

LANES = 128          # lane width of the packed parameter buffer
NEG_INF = -1e30      # additive mask value (finite -> exp underflows to 0, no NaN)

# Row offsets inside the packed parameter buffer (all sublane multiples of 8).
OFF_WFUSED = 0                        # rows [0, 2D): fused qkv weights
OFF_VECS = 2 * D_MODEL                # 8-row group: biases, LN params, blkmap
OFF_WOUT = OFF_VECS + 8               # rows [.., ..+D): attention out_proj
OFF_COLMASK = OFF_WOUT + D_MODEL      # rows [.., ..+NHEAD*BLb): head column mask


def _round_up(x, m):
    return (x + m - 1) // m * m


def _make_kernel(BLb):
    """BLb = rows (batch_block * L) handled per grid step."""
    D = D_MODEL
    HBL = NHEAD * BLb
    off_addmask = _round_up(OFF_COLMASK + HBL, 8)

    def kernel(tgt_ref, pos_ref, prm_ref, out_ref):
        tgt = tgt_ref[...]                                    # (BLb, D)
        pos = pos_ref[...]                                    # (BLb, D)

        # ---- packed parameters: one DMA, static ref slices ----------------
        wc = prm_ref[0:D, 0:3 * D]                            # content -> q|k|v
        wp = prm_ref[D:2 * D, 0:3 * D]                        # pos     -> q|k|0
        vecs = prm_ref[OFF_VECS:OFF_VECS + 8, :]              # (8, 128) tile
        b_qkv = vecs[0:1, 0:3 * D]                            # (1, 3D)
        b_out = vecs[1:2, 0:D]                                # (1, D)
        gamma = vecs[2:3, 0:D]                                # (1, D)
        beta = vecs[3:4, 0:D]                                 # (1, D)
        blkmap_t = vecs[4:4 + NHEAD, 0:HBL]                   # (NHEAD, HBL)
        w_out = prm_ref[OFF_WOUT:OFF_WOUT + D, 0:D]           # (D, D)
        colmask = prm_ref[OFF_COLMASK:OFF_COLMASK + HBL, 0:D]  # (HBL, D)
        addmask = prm_ref[off_addmask:off_addmask + BLb, 0:HBL]  # (BLb, HBL)

        # ---- fused q|k|v projection (1/sqrt(head_dim) folded into weights) -
        qkv = (jnp.dot(tgt, wc, preferred_element_type=jnp.float32)
               + jnp.dot(pos, wp, preferred_element_type=jnp.float32)
               + b_qkv)                                       # (BLb, 3D)
        q = qkv[:, 0:D]
        k = qkv[:, D:2 * D]
        v = qkv[:, 2 * D:3 * D]

        # ---- flattened all-heads 2D attention ------------------------------
        # K/V replicated per head along sublanes; other heads' feature
        # columns are zeroed so one plain 2D matmul computes every head.
        krep = jnp.concatenate([k] * NHEAD, axis=0) * colmask  # (HBL, D)
        vrep = jnp.concatenate([v] * NHEAD, axis=0) * colmask  # (HBL, D)

        # scores: (BLb, HBL); block h columns hold head-h scores. NT matmul.
        s = lax.dot_general(q, krep, (((1,), (1,)), ((), ())),
                            preferred_element_type=jnp.float32) + addmask
        s = s - jnp.max(s, axis=-1, keepdims=True)   # global row max (stable)
        p = jnp.exp(s)                               # one EUP pass for all heads

        # per-(row, head-block) denominators via two tiny indicator matmuls
        # (keeps everything 2D: no lane reshapes / concatenates).
        denom_h = lax.dot_general(p, blkmap_t, (((1,), (1,)), ((), ())),
                                  preferred_element_type=jnp.float32)  # (BLb, NHEAD)
        denom = jnp.dot(denom_h, blkmap_t,
                        preferred_element_type=jnp.float32)            # (BLb, HBL)
        p = p / denom                                # exact (review: no approx rcp)

        attn = jnp.dot(p, vrep, preferred_element_type=jnp.float32)    # (BLb, D)

        # ---- out_proj + residual (dropout=0) + LayerNorm --------------------
        tgt2 = jnp.dot(attn, w_out, preferred_element_type=jnp.float32) + b_out
        x = tgt + tgt2
        mean = jnp.mean(x, axis=-1, keepdims=True)
        xc = x - mean
        var = jnp.mean(xc * xc, axis=-1, keepdims=True)
        out_ref[...] = xc * lax.rsqrt(var + LN_EPS) * gamma + beta

    return kernel


def _pack_params(params, BLb, L):
    """Pack all parameters + constant masks into one lane-padded f32 buffer."""
    D = D_MODEL
    HBL = NHEAD * BLb
    assert 3 * D <= LANES and HBL <= LANES, "packing scheme assumes <=128 lanes"
    off_addmask = _round_up(OFF_COLMASK + HBL, 8)
    R = off_addmask + _round_up(BLb, 8)

    w = params["w"]               # (6, D, D), already transposed: y = x @ w[i]
    b = params["b"][:, 0, :]      # (6, D)
    ln = params["ln"][:, 0, :]    # (2, D)
    scale = 1.0 / math.sqrt(HEAD_DIM)

    # Fused projections: columns 0:D -> q (pre-scaled), D:2D -> k, 2D:3D -> v.
    wc = jnp.concatenate([w[0] * scale, w[2], w[4]], axis=1)               # (D, 3D)
    wp = jnp.concatenate([w[1] * scale, w[3], jnp.zeros_like(w[3])], axis=1)
    b_qkv = jnp.concatenate([(b[0] + b[1]) * scale, b[2] + b[3], b[4]])    # (3D,)

    # Constant masks (built once wrapper-side, DMA'd with the weights).
    row_head = jnp.arange(HBL) // BLb                              # head of K/V row
    col_head = jnp.arange(D) // HEAD_DIM                           # head of feature col
    colmask = (row_head[:, None] == col_head[None, :]).astype(jnp.float32)
    blkmap_t = (jnp.arange(NHEAD)[:, None] == row_head[None, :]).astype(jnp.float32)
    qb = jnp.arange(BLb) // L
    kb = (jnp.arange(HBL) % BLb) // L
    addmask = jnp.where(qb[:, None] == kb[None, :], 0.0, NEG_INF).astype(jnp.float32)

    buf = jnp.zeros((R, LANES), jnp.float32)
    buf = buf.at[0:D, 0:3 * D].set(wc)
    buf = buf.at[D:2 * D, 0:3 * D].set(wp)
    buf = buf.at[OFF_VECS + 0, 0:3 * D].set(b_qkv)
    buf = buf.at[OFF_VECS + 1, 0:D].set(b[5])
    buf = buf.at[OFF_VECS + 2, 0:D].set(ln[0])
    buf = buf.at[OFF_VECS + 3, 0:D].set(ln[1])
    buf = buf.at[OFF_VECS + 4:OFF_VECS + 4 + NHEAD, 0:HBL].set(blkmap_t)
    buf = buf.at[OFF_WOUT:OFF_WOUT + D, 0:D].set(w[5])
    buf = buf.at[OFF_COLMASK:OFF_COLMASK + HBL, 0:D].set(colmask)
    buf = buf.at[off_addmask:off_addmask + BLb, 0:HBL].set(addmask)
    return buf


def self_attention_layer(tgt, query_pos, params, *, grid_b=1):
    """tgt, query_pos: (B, L, D) float32. Returns (B, L, D) float32.

    grid_b: number of batch blocks (grid steps). Keep 1 on single-TC chips
    (v5e/v6e); on v7x pass grid_b=2 so the "parallel" grid axis puts one
    batch block on each TensorCore.
    """
    B, L, D = tgt.shape
    assert D == D_MODEL
    assert B % grid_b == 0
    BLb = (B // grid_b) * L

    prm = _pack_params(params, BLb, L)
    R = prm.shape[0]
    tgt2d = tgt.reshape(B * L, D)          # contiguous view, no extra HBM traffic
    pos2d = query_pos.reshape(B * L, D)

    out = pl.pallas_call(
        _make_kernel(BLb),
        out_shape=jax.ShapeDtypeStruct((B * L, D), jnp.float32),
        grid_spec=pltpu.PrefetchScalarGridSpec(
            num_scalar_prefetch=0,
            grid=(grid_b,),
            in_specs=[
                pl.BlockSpec((BLb, D), lambda i: (i, 0)),        # tgt rows
                pl.BlockSpec((BLb, D), lambda i: (i, 0)),        # query_pos rows
                pl.BlockSpec((R, LANES), lambda i: (0, 0)),      # packed params
            ],
            out_specs=pl.BlockSpec((BLb, D), lambda i: (i, 0)),
        ),
        compiler_params=pltpu.CompilerParams(
            dimension_semantics=("parallel",)),
    )(tgt2d, pos2d, prm)

    return out.reshape(B, L, D)


def init_params(key):
    """Deterministic synthetic init mirroring the module's parameter shapes.

    Linear weights: xavier_uniform (as in _reset_parameters); biases: small
    uniform (torch Linear default); LayerNorm: ones / zeros.
    """
    kw, kb = jax.random.split(key)
    limit = math.sqrt(6.0 / (D_MODEL + D_MODEL))
    w = jax.random.uniform(kw, (6, D_MODEL, D_MODEL), jnp.float32, -limit, limit)
    blim = 1.0 / math.sqrt(D_MODEL)
    b = jax.random.uniform(kb, (6, 1, D_MODEL), jnp.float32, -blim, blim)
    ln = jnp.stack([jnp.ones((1, D_MODEL), jnp.float32),
                    jnp.zeros((1, D_MODEL), jnp.float32)], axis=0)
    return {"w": w, "b": b, "ln": ln}


def reference(tgt, qpos, params):
    """Pure-JAX f32 reference (highest matmul precision) for correctness."""
    B, L, D = tgt.shape
    w = params["w"]
    b = params["b"][:, 0, :]
    ln = params["ln"][:, 0, :]
    hp = jax.lax.Precision.HIGHEST

    def proj(x, i):
        return jnp.matmul(x, w[i], precision=hp) + b[i]

    q = proj(tgt, 0) + proj(qpos, 1)
    k = proj(tgt, 2) + proj(qpos, 3)
    v = proj(tgt, 4)

    qh = q.reshape(B, L, NHEAD, HEAD_DIM) / math.sqrt(HEAD_DIM)
    kh = k.reshape(B, L, NHEAD, HEAD_DIM)
    vh = v.reshape(B, L, NHEAD, HEAD_DIM)
    s = jnp.einsum('blhd,bmhd->bhlm', qh, kh, precision=hp)
    p = jax.nn.softmax(s, axis=-1)
    o = jnp.einsum('bhlm,bmhd->blhd', p, vh, precision=hp).reshape(B, L, D)
    tgt2 = jnp.matmul(o, w[5], precision=hp) + b[5]

    x = tgt + tgt2
    mean = x.mean(-1, keepdims=True)
    var = ((x - mean) ** 2).mean(-1, keepdims=True)
    return (x - mean) / jnp.sqrt(var + LN_EPS) * ln[0] + ln[1]


# TODO(synk): attn_mask / key_padding_mask and dropout > 0 are not implemented
# (this config uses dropout=0.0 and no masks, matching forward_post above).

if __name__ == "__main__":
    B, L = 2, 8   # batch=2, num queries=8, d_model=32, nhead=4
    key = jax.random.PRNGKey(0)
    k_tgt, k_pos, k_par = jax.random.split(key, 3)

    tgt = jax.random.normal(k_tgt, (B, L, D_MODEL), jnp.float32)
    query_pos = jax.random.normal(k_pos, (B, L, D_MODEL), jnp.float32)
    params = init_params(k_par)

    out = self_attention_layer(tgt, query_pos, params)   # grid_b=2 on v7x
    out = jax.block_until_ready(out)

    ref = reference(tgt, query_pos, params)
    assert out.shape == (B, L, D_MODEL)
    err = jnp.max(jnp.abs(out - ref))
    # Exact softmax (no approx reciprocal) restores reference parity at 1e-4.
    assert jnp.allclose(out, ref, atol=1e-4, rtol=1e-4), f"max abs err {err}"

    print("KERNEL_OK")
</pallas_src>

<mosaic_0001>
module attributes {stable_mosaic.version = 11 : i64} {
  func.func @kernel(%arg0: i32, %arg1: memref<16x32xf32, #tpu.memory_space<vmem>>, %arg2: memref<16x32xf32, #tpu.memory_space<vmem>>, %arg3: memref<184x128xf32, #tpu.memory_space<vmem>>, %arg4: memref<16x32xf32, #tpu.memory_space<vmem>>) attributes {dimension_semantics = [#tpu.dimension_semantics<parallel>], iteration_bounds = array<i64: 1>, scalar_prefetch = 0 : i64, scratch_operands = 0 : i64, tpu.core_type = #tpu.core_type<tc>, window_params = [{transform_indices = @transform_0, window_bounds = array<i64: 16, 32>}, {transform_indices = @transform_1, window_bounds = array<i64: 16, 32>}, {pipeline_mode = #tpu.pipeline_mode<synchronous>, transform_indices = @transform_2, window_bounds = array<i64: 184, 128>}, {transform_indices = @transform_3, window_bounds = array<i64: 16, 32>}]} {
    %c0 = arith.constant 0 : index
    %c0_0 = arith.constant 0 : index
    %0 = vector.load %arg1[%c0, %c0_0] : memref<16x32xf32, #tpu.memory_space<vmem>>, vector<16x32xf32>
    %c0_1 = arith.constant 0 : index
    %c0_2 = arith.constant 0 : index
    %1 = vector.load %arg2[%c0_1, %c0_2] : memref<16x32xf32, #tpu.memory_space<vmem>>, vector<16x32xf32>
    %c0_3 = arith.constant 0 : index
    %c0_4 = arith.constant 0 : index
    %2 = vector.load %arg3[%c0_3, %c0_4] : memref<184x128xf32, #tpu.memory_space<vmem>>, vector<32x96xf32>
    %c32 = arith.constant 32 : index
    %c0_5 = arith.constant 0 : index
    %3 = vector.load %arg3[%c32, %c0_5] : memref<184x128xf32, #tpu.memory_space<vmem>>, vector<32x96xf32>
    %c64 = arith.constant 64 : index
    %c0_6 = arith.constant 0 : index
    %4 = vector.load %arg3[%c64, %c0_6] : memref<184x128xf32, #tpu.memory_space<vmem>>, vector<8x128xf32>
    %5 = vector.extract_strided_slice %4 {offsets = [0, 0], sizes = [1, 96], strides = [1, 1]} : vector<8x128xf32> to vector<1x96xf32>
    %6 = vector.extract_strided_slice %4 {offsets = [1, 0], sizes = [1, 32], strides = [1, 1]} : vector<8x128xf32> to vector<1x32xf32>
    %7 = vector.extract_strided_slice %4 {offsets = [2, 0], sizes = [1, 32], strides = [1, 1]} : vector<8x128xf32> to vector<1x32xf32>
    %8 = vector.extract_strided_slice %4 {offsets = [3, 0], sizes = [1, 32], strides = [1, 1]} : vector<8x128xf32> to vector<1x32xf32>
    %9 = vector.extract_strided_slice %4 {offsets = [4, 0], sizes = [4, 64], strides = [1, 1]} : vector<8x128xf32> to vector<4x64xf32>
    %c72 = arith.constant 72 : index
    %c0_7 = arith.constant 0 : index
    %10 = vector.load %arg3[%c72, %c0_7] : memref<184x128xf32, #tpu.memory_space<vmem>>, vector<32x32xf32>
    %c104 = arith.constant 104 : index
    %c0_8 = arith.constant 0 : index
    %11 = vector.load %arg3[%c104, %c0_8] : memref<184x128xf32, #tpu.memory_space<vmem>>, vector<64x32xf32>
    %c168 = arith.constant 168 : index
    %c0_9 = arith.constant 0 : index
    %12 = vector.load %arg3[%c168, %c0_9] : memref<184x128xf32, #tpu.memory_space<vmem>>, vector<16x64xf32>
    %cst = arith.constant dense<0.000000e+00> : vector<16x96xf32>
    %13 = tpu.matmul %0, %2, %cst {dimension_numbers = #tpu.dot_dimension_numbers<[1], [0], [0], [1], [0, 0, 1, 1], [], []>} : vector<16x32xf32>, vector<32x96xf32>, vector<16x96xf32> -> vector<16x96xf32>
    %cst_10 = arith.constant dense<0.000000e+00> : vector<16x96xf32>
    %14 = tpu.matmul %1, %3, %cst_10 {dimension_numbers = #tpu.dot_dimension_numbers<[1], [0], [0], [1], [0, 0, 1, 1], [], []>} : vector<16x32xf32>, vector<32x96xf32>, vector<16x96xf32> -> vector<16x96xf32>
    %15 = arith.addf %13, %14 : vector<16x96xf32>
    %16 = vector.broadcast %5 : vector<1x96xf32> to vector<16x96xf32>
    %17 = arith.addf %15, %16 : vector<16x96xf32>
    %18 = vector.extract_strided_slice %17 {offsets = [0, 0], sizes = [16, 32], strides = [1, 1]} : vector<16x96xf32> to vector<16x32xf32>
    %19 = vector.extract_strided_slice %17 {offsets = [0, 32], sizes = [16, 32], strides = [1, 1]} : vector<16x96xf32> to vector<16x32xf32>
    %20 = vector.extract_strided_slice %17 {offsets = [0, 64], sizes = [16, 32], strides = [1, 1]} : vector<16x96xf32> to vector<16x32xf32>
    %21 = tpu.concatenate %19, %19, %19, %19 in 0 : vector<16x32xf32>, vector<16x32xf32>, vector<16x32xf32>, vector<16x32xf32> -> vector<64x32xf32>
    %22 = arith.mulf %21, %11 : vector<64x32xf32>
    %23 = tpu.concatenate %20, %20, %20, %20 in 0 : vector<16x32xf32>, vector<16x32xf32>, vector<16x32xf32>, vector<16x32xf32> -> vector<64x32xf32>
    %24 = arith.mulf %23, %11 : vector<64x32xf32>
    %cst_11 = arith.constant dense<0.000000e+00> : vector<16x64xf32>
    %25 = tpu.matmul %18, %22, %cst_11 {dimension_numbers = #tpu.dot_dimension_numbers<[1], [1], [0], [0], [0, 0, 1, 0], [], []>} : vector<16x32xf32>, vector<64x32xf32>, vector<16x64xf32> -> vector<16x64xf32>
    %26 = arith.addf %25, %12 : vector<16x64xf32>
    %cst_12 = arith.constant dense<0xFF800000> : vector<16xf32>
    %27 = vector.multi_reduction <maximumf>, %26, %cst_12 [1] : vector<16x64xf32> to vector<16xf32>
    %28 = vector.shape_cast %27 : vector<16xf32> to vector<16x1xf32>
    %29 = vector.broadcast %28 : vector<16x1xf32> to vector<16x64xf32>
    %30 = arith.subf %26, %29 : vector<16x64xf32>
    %31 = math.exp %30 : vector<16x64xf32>
    %cst_13 = arith.constant dense<0.000000e+00> : vector<16x4xf32>
    %32 = tpu.matmul %31, %9, %cst_13 {dimension_numbers = #tpu.dot_dimension_numbers<[1], [1], [0], [0], [0, 0, 1, 0], [], []>} : vector<16x64xf32>, vector<4x64xf32>, vector<16x4xf32> -> vector<16x4xf32>
    %cst_14 = arith.constant dense<0.000000e+00> : vector<16x64xf32>
    %33 = tpu.matmul %32, %9, %cst_14 {dimension_numbers = #tpu.dot_dimension_numbers<[1], [0], [0], [1], [0, 0, 1, 1], [], []>} : vector<16x4xf32>, vector<4x64xf32>, vector<16x64xf32> -> vector<16x64xf32>
    %34 = arith.divf %31, %33 : vector<16x64xf32>
    %cst_15 = arith.constant dense<0.000000e+00> : vector<16x32xf32>
    %35 = tpu.matmul %34, %24, %cst_15 {dimension_numbers = #tpu.dot_dimension_numbers<[1], [0], [0], [1], [0, 0, 1, 1], [], []>} : vector<16x64xf32>, vector<64x32xf32>, vector<16x32xf32> -> vector<16x32xf32>
    %cst_16 = arith.constant dense<0.000000e+00> : vector<16x32xf32>
    %36 = tpu.matmul %35, %10, %cst_16 {dimension_numbers = #tpu.dot_dimension_numbers<[1], [0], [0], [1], [0, 0, 1, 1], [], []>} : vector<16x32xf32>, vector<32x32xf32>, vector<16x32xf32> -> vector<16x32xf32>
    %37 = vector.broadcast %6 : vector<1x32xf32> to vector<16x32xf32>
    %38 = arith.addf %36, %37 : vector<16x32xf32>
    %39 = arith.addf %0, %38 : vector<16x32xf32>
    %cst_17 = arith.constant dense<0.000000e+00> : vector<16xf32>
    %40 = vector.multi_reduction <add>, %39, %cst_17 [1] : vector<16x32xf32> to vector<16xf32>
    %41 = vector.shape_cast %40 : vector<16xf32> to vector<16x1xf32>
    %cst_18 = arith.constant 3.200000e+01 : f32
    %42 = vector.broadcast %cst_18 : f32 to vector<16x1xf32>
    %43 = arith.divf %41, %42 : vector<16x1xf32>
    %44 = vector.broadcast %43 : vector<16x1xf32> to vector<16x32xf32>
    %45 = arith.subf %39, %44 : vector<16x32xf32>
    %46 = arith.mulf %45, %45 : vector<16x32xf32>
    %cst_19 = arith.constant dense<0.000000e+00> : vector<16xf32>
    %47 = vector.multi_reduction <add>, %46, %cst_19 [1] : vector<16x32xf32> to vector<16xf32>
    %48 = vector.shape_cast %47 : vector<16xf32> to vector<16x1xf32>
    %cst_20 = arith.constant 3.200000e+01 : f32
    %49 = vector.broadcast %cst_20 : f32 to vector<16x1xf32>
    %50 = arith.divf %48, %49 : vector<16x1xf32>
    %cst_21 = arith.constant 9.99999974E-6 : f32
    %51 = vector.broadcast %cst_21 : f32 to vector<16x1xf32>
    %52 = arith.addf %50, %51 : vector<16x1xf32>
    %53 = math.rsqrt %52 : vector<16x1xf32>
    %54 = vector.broadcast %53 : vector<16x1xf32> to vector<16x32xf32>
    %55 = arith.mulf %45, %54 : vector<16x32xf32>
    %56 = vector.broadcast %7 : vector<1x32xf32> to vector<16x32xf32>
    %57 = arith.mulf %55, %56 : vector<16x32xf32>
    %58 = vector.broadcast %8 : vector<1x32xf32> to vector<16x32xf32>
    %59 = arith.addf %57, %58 : vector<16x32xf32>
    %c0_22 = arith.constant 0 : index
    %c0_23 = arith.constant 0 : index
    %60 = vector.load %arg4[%c0_22, %c0_23] : memref<16x32xf32, #tpu.memory_space<vmem>>, vector<16x32xf32>
    tpu.vector_store %arg4[%c0_22, %c0_23], %59 {strides = array<i32>} : memref<16x32xf32, #tpu.memory_space<vmem>>, vector<16x32xf32>,
    return
  }
  func.func @transform_0(%arg0: i32) -> (i32, i32) {
    %c0_i32 = arith.constant 0 : i32
    %c0_i32_0 = arith.constant 0 : i32
    return %arg0, %c0_i32 : i32, i32
  }
  func.func @transform_1(%arg0: i32) -> (i32, i32) {
    %c0_i32 = arith.constant 0 : i32
    %c0_i32_0 = arith.constant 0 : i32
    return %arg0, %c0_i32 : i32, i32
  }
  func.func @transform_2(%arg0: i32) -> (i32, i32) {
    %c0_i32 = arith.constant 0 : i32
    %c0_i32_0 = arith.constant 0 : i32
    %c0_i32_1 = arith.constant 0 : i32
    return %c0_i32, %c0_i32_0 : i32, i32
  }
  func.func @transform_3(%arg0: i32) -> (i32, i32) {
    %c0_i32 = arith.constant 0 : i32
    %c0_i32_0 = arith.constant 0 : i32
    return %arg0, %c0_i32 : i32, i32
  }
}

</mosaic_0001>

<bundles_post_ra>
// kernel: tpu_custom_call.1
= control target key start
LH: loop header
LB: loop body
LE: loop exit
PB: predicated region body
PF: predicated region fallthrough
CT: control target
= control target key end

     0   :  { %8 = vsyncpa [#allocation3], 0  ;;  %s895_s0 = inlined_call_operand.hbm [shape: f32[16,32], index: 0, kind: input, shape index: {}]   ;;  %s896_s1 = inlined_call_operand.hbm [shape: f32[16,32], index: 1, kind: input, shape index: {}]   ;;  %s897_s2 = inlined_call_operand.hbm [shape: f32[184,128], index: 2, kind: input, shape index: {}]   ;;  %s898_s3 = inlined_call_operand.hbm [shape: f32[16,32], index: 3, kind: output, shape index: {}]  }
   0x1   :  { %9 = vsyncpa [#allocation6], 0 }
   0x2   :  { %10 = vsyncpa [#allocation4], 0  ;;  %s28_s14 = sshll.u32 %s896_s1, 4  ;;  %s743_s15 = smov [#allocation5]   ;;  %s29_s14 = int_to_ptr.hbm [resolvable:$true] %s28_s14 }
   0x3   :  { %s30_s16 = sshll.u32 %s743_s15, 4  ;;  %s15_s19 = sshll.u32 %s895_s0, 4  ;;  %s31_s16 = int_to_ptr.vmem [resolvable:$true] %s30_s16  ;;  %s16_s19 = int_to_ptr.hbm [resolvable:$true] %s15_s19 }
   0x4   :  { %s744_s20 = smov 128   ;;  %s745_s21 = smov 8  }
   0x5   :  { %36 = dma.hbm_to_vmem [thread:$0]  %s29_s14, 256, %s31_s16, [#allocation6], %s744_s20, %s744_s20, %s745_s21  }
   0x6   :  { %s746_s22 = smov [#allocation2]   ;;  %s41_s1 = sshll.u32 %s897_s2, 4  ;;  %s42_s1 = int_to_ptr.hbm [resolvable:$true] %s41_s1 }
   0x7   :  { %s17_s23 = sshll.u32 %s746_s22, 4  ;;  %s747_s0 = smov [#allocation7]   ;;  %s18_s23 = int_to_ptr.vmem [resolvable:$true] %s17_s23 }
   0x8   :  { %23 = dma.hbm_to_vmem [thread:$0]  %s16_s19, 256, %s18_s23, [#allocation3], %s744_s20, %s744_s20, %s745_s21  }
   0x9   :  { %s43_s26 = sshll.u32 %s747_s0, 4  ;;  %s44_s26 = int_to_ptr.vmem [resolvable:$true] %s43_s26 }
   0xa   :  { %49 = dma.hbm_to_vmem [thread:$0]  %s42_s1, 2944, %s44_s26, [#allocation6], %s744_s20, %s744_s20, %s745_s21  }
   0xb   :  { %737 = dma.done.wait [#allocation3], 256  }
   0xc   :  { %738 = vsyncadd [#allocation3], 4294967040 }
   0xd   :  { %739 = dma.done.wait [#allocation6], 3200  }
   0xe   :  { %740 = vsyncadd [#allocation6], 4294964096  ;;  %v73_v0 = vld [vmem:[#allocation7 + $0x38] sm:$0xff]  ;;  %v72_v2 = vld [vmem:[#allocation7 + $0x30] sm:$0xff]  ;;  %s748_s2 = smov 32   ;;  %vm89_vm0 = vcmask 261120  }
   0xf   :  { %v69_v1 = vld [vmem:[#allocation7 + $0x18] sm:$0xff]  ;;  %108 = vmatpush.msra.mxu0 %v73_v0  ;;  %v68_v3 = vld [vmem:[#allocation7 + $0x10] sm:$0xff]  ;;  %v71_v4 = vld [vmem:[#allocation7 + $0x28] sm:$0xff]  ;;  %s749_s27 = smov 96   ;;  %s750_s28 = smov 64   ;;  %vm292_vm1 = vcmask 523264  }
  0x10   :  { %137 = vmatpush.msra.mxu1 %v69_v1  ;;  %v67_v5 = vld [vmem:[#allocation7 + $0x8] sm:$0xff]  ;;  %v791_v6 = vld [vmem:[#allocation7 + $0x90] sm:$0xff]  ;;  %v793_v7 = vld [vmem:[#allocation7 + $0xa0] sm:$0xff]  ;;  %vm345_vm2 = vcmask 1043456   ;;  %vm338_vm3 = vcmask 31744   ;;  %s752_s29 = smov [#allocation8]  }
  0x11   :  { %109 = vmatpush.msra.mxu0 %v72_v2  ;;  %169 = vrot.lane.b32.xlu1 %v791_v6, %s748_s2  ;;  %v70_v8 = vld [vmem:[#allocation7 + $0x20] sm:$0xff]  ;;  %v64_v10 = vld [vmem:[#allocation5] sm:$0xff]  ;;  %v83_v13 = vld [vmem:[#allocation7 + $0x88] sm:$0xff]  ;;  %s557_s30 = sshll.u32 %s752_s29, 4  ;;  %s559_s6 = sshll.u32 %s898_s3, 4  ;;  %s558_s30 = int_to_ptr.vmem [resolvable:$true] %s557_s30  ;;  %s560_s6 = int_to_ptr.hbm [resolvable:$true] %s559_s6 }
  0x12   :  { %138 = vmatpush.msra.mxu1 %v68_v3  ;;  %v66_v9 = vld [vmem:[#allocation7] sm:$0xff]  ;;  %173 = vrot.lane.b32.xlu0 %v793_v7, %s748_s2  ;;  %v85_v14 = vld [vmem:[#allocation7 + $0x98] sm:$0xff]  ;;  %v802_v16 = vld [vmem:[#allocation2 + $0x8] sm:$0xff] }
  0x13   :  { %110 = vmatpush.msra.mxu0 %v71_v4  ;;  %v797_v11 = vld [vmem:[#allocation2] sm:$0xff]  ;;  %v65_v15 = vld [vmem:[#allocation5 + $0x8] sm:$0xff]  ;;  %v79_v18 = vld [vmem:[#allocation7 + $0x68] sm:$0xff] }
  0x14   :  { %139 = vmatpush.msra.mxu1 %v67_v5  ;;  %v82_v12 = vld [vmem:[#allocation7 + $0x80] sm:$0xff]  ;;  %v804_v17 = vld [vmem:[#allocation7 + $0x78] sm:$0xff]  ;;  %v809_v19 = vld [vmem:[#allocation7 + $0x70] sm:$0xff] }
  0x15   :  { %111 = vmatpush.msra.mxu0 %v70_v8  ;;  %165 = vrot.lane.b32.xlu2 %v82_v12, %s748_s2  ;;  %v813_v21 = vld [vmem:[#allocation7 + $0x40] sm:$0xff]  ;;  %v87_v5 = vld [vmem:[#allocation7 + $0xa8] sm:$0xff] }
  0x16   :  { %140 = vmatpush.msra.mxu1 %v66_v9  ;;  %573 = vmatmul.msk.f32.vlgmr.msra.gmra.mxu0 %vm89_vm0, %v64_v10  ;;  %v148_v23 = vperm.slane %v813_v21, 0 }
  0x17   :  { %575 = vmatmul.msk.f32.vlgmr.msra.gmra.mxu1 %vm89_vm0, %v797_v11 }
  0x19   :  { %167 = vrot.lane.b32.xlu1 %v83_v13, %s748_s2 }
  0x1a   :  { %171 = vrot.lane.b32.xlu0 %v85_v14, %s748_s2 }
  0x1d   :  { %163 = vrot.lane.b32.xlu2 %v804_v17, %s748_s2 }
  0x1e   :  { %574 = vmatmul.msk.f32.gmra.mxu0 %vm89_vm0, %v65_v15 }
  0x1f   :  { %576 = vmatmul.msk.f32.gmra.mxu1 %vm89_vm0, %v802_v16 }
  0x21   :  { %159 = vrot.lane.b32.xlu1 %v79_v18, %s748_s2 }
  0x22   :  { %161 = vrot.lane.b32.xlu0 %v809_v19, %s748_s2 }
  0x6f   :  { %v166_v30 = vpop.permute.xlu2 %165 }
  0x77   :  { %v164_v39 = vpop.permute.xlu2 %163 }
  0x83   :  { %v170_v22 = vpop.permute.xlu1 %169 }
  0x84   :  { %v174_v20 = vpop.permute.xlu0 %173 }
  0x8b   :  { %v168_v33 = vpop.permute.xlu1 %167 }
  0x8c   :  { %v172_v27 = vpop.permute.xlu0 %171 }
  0x93   :  { %v113_v24 = vpop.f32.mrf.mxu0  ;;  %v160_v40 = vpop.permute.xlu1 %159 }
  0x94   :  { %v142_v25 = vpop.f32.mrf.mxu1  ;;  %v162_v44 = vpop.permute.xlu0 %161 }
  0x95   :  { %v143_v26 = vadd.f32 %v142_v25, %v113_v24 }
  0x97   :  { %v816_v28 = vadd.f32 %v148_v23, %v143_v26 }
  0x99   :  { %v189_v29 = vmul.f32 %v172_v27, %v816_v28  ;;  %v185_v41 = vmul.f32 %v164_v39, %v816_v28  ;;  %v187_v42 = vmul.f32 %v168_v33, %v816_v28  ;;  %v183_v43 = vmul.f32 %v160_v40, %v816_v28 }
  0x9b   :  { %243 = vrot.lane.b32.xlu0 %v189_v29, %s749_s27  ;;  %v116_v31 = vpop.f32.mrf.mxu0 }
  0x9c   :  { %v145_v32 = vpop.f32.mrf.mxu1 }
  0x9d   :  { %v146_v34 = vadd.f32 %v145_v32, %v116_v31 }
  0x9f   :  { %v819_v35 = vadd.f32 %v148_v23, %v146_v34 }
  0xa1   :  { %v190_v36 = vmul.f32 %v174_v20, %v819_v35  ;;  %v188_v37 = vmul.f32 %v170_v22, %v819_v35  ;;  %v186_v38 = vmul.f32 %v166_v30, %v819_v35  ;;  %v184_v45 = vmul.f32 %v162_v44, %v819_v35 }
  0xa2   :  { %v306_v20 = vrot.slane %v813_v21, 4 }
  0xa3   :  { %245 = vrot.lane.b32.xlu2 %v190_v36, %s749_s27  ;;  %241 = vrot.lane.b32.xlu1 %v188_v37, %s749_s27 }
  0xa4   :  { %237 = vrot.lane.b32.xlu0 %v186_v38, %s749_s27  ;;  %587 = vmatpush.xpose.msk.msra.mxu3 %vm292_vm1, %v306_v20 }
  0xa8   :  { %590 = vmatpush.msk.msrb.mxu3 %vm345_vm2, %v306_v20 }
  0xab   :  { %239 = vrot.lane.b32.xlu2 %v187_v42, %s749_s27  ;;  %235 = vrot.lane.b32.xlu1 %v185_v41, %s749_s27 }
  0xac   :  { %231 = vrot.lane.b32.xlu0 %v183_v43, %s749_s27 }
  0xb3   :  { %233 = vrot.lane.b32.xlu2 %v184_v45, %s749_s27  ;;  %v77_v45 = vld [vmem:[#allocation7 + $0x58] sm:$0xff] }
  0xb4   :  { %205 = vrot.lane.b32.xlu0 %v793_v7, %s750_s28 }
  0xbc   :  { %203 = vrot.lane.b32.xlu0 %v85_v14, %s750_s28 }
  0xc4   :  { %201 = vrot.lane.b32.xlu0 %v791_v6, %s750_s28 }
  0xcc   :  { %199 = vrot.lane.b32.xlu0 %v83_v13, %s750_s28 }
  0xd4   :  { %197 = vrot.lane.b32.xlu0 %v82_v12, %s750_s28  ;;  %v88_v12 = vld [vmem:[#allocation7 + $0xb0] sm:$0xff] }
  0xdc   :  { %191 = vrot.lane.b32.xlu0 %v79_v18, %s750_s28 }
  0xfd   :  { %v246_v46 = vpop.permute.xlu2 %245 }
  0xfe   :  { %577 = vmatpush.xpose.msk.msra.mxu2 %vm89_vm0, %v246_v46  ;;  %v76_v46 = vld [vmem:[#allocation7 + $0x50] sm:$0xff] }
 0x105   :  { %v240_v50 = vpop.permute.xlu2 %239 }
 0x10d   :  { %v244_v47 = vpop.permute.xlu0 %243  ;;  %v234_v53 = vpop.permute.xlu2 %233 }
 0x10e   :  { %578 = vmatpush.xpose.msk.msra.mxu2 %vm89_vm0, %v244_v47 }
 0x115   :  { %v242_v48 = vpop.permute.xlu1 %241 }
 0x116   :  { %v238_v49 = vpop.permute.xlu0 %237  ;;  %579 = vmatpush.xpose.msk.msra.mxu2 %vm89_vm0, %v242_v48  ;;  %v75_v48 = vld [vmem:[#allocation7 + $0x48] sm:$0xff] }
 0x11a   :  { %580 = vmatpush.xpose.msk.msra.mxu2 %vm89_vm0, %v240_v50 }
 0x11d   :  { %v236_v52 = vpop.permute.xlu1 %235 }
 0x11e   :  { %v232_v51 = vpop.permute.xlu0 %231  ;;  %581 = vmatpush.xpose.msk.msra.mxu2 %vm89_vm0, %v238_v49 }
 0x122   :  { %582 = vmatpush.xpose.msk.msra.mxu2 %vm89_vm0, %v236_v52 }
 0x126   :  { %v206_v54 = vpop.permute.xlu0 %205  ;;  %583 = vmatpush.xpose.msk.msra.mxu2 %vm89_vm0, %v234_v53 }
 0x127   :  { %v222_v56 = vmul.f32 %v206_v54, %v819_v35 }
 0x12a   :  { %584 = vmatpush.xpose.msk.msra.mxu2 %vm89_vm0, %v232_v51 }
 0x12d   :  { %585 = vmatmul.msk.f32.vlgmr.msra.gmra.mxu2 %vm89_vm0, %v816_v28 }
 0x12e   :  { %v204_v55 = vpop.permute.xlu0 %203 }
 0x12f   :  { %v221_v57 = vmul.f32 %v204_v55, %v816_v28 }
 0x131   :  { %v607_v58 = vpack.i.bf16 %v221_v57, %v222_v56 }
 0x133   :  { %608 = vrot.lane.b32.xlu0 %v607_v58, %s750_s28 }
 0x135   :  { %586 = vmatmul.msk.f32.gmra.mxu2 %vm89_vm0, %v819_v35 }
 0x136   :  { %v202_v59 = vpop.permute.xlu0 %201 }
 0x137   :  { %v220_v61 = vmul.f32 %v202_v59, %v819_v35 }
 0x13e   :  { %v200_v60 = vpop.permute.xlu0 %199 }
 0x13f   :  { %v219_v62 = vmul.f32 %v200_v60, %v816_v28 }
 0x141   :  { %v612_v63 = vpack.i.bf16 %v219_v62, %v220_v61 }
 0x143   :  { %613 = vrot.lane.b32.xlu0 %v612_v63, %s750_s28 }
 0x146   :  { %v198_v0 = vpop.permute.xlu0 %197 }
 0x14e   :  { %v192_v1 = vpop.permute.xlu0 %191 }
 0x14f   :  { %v215_v34 = vmul.f32 %v192_v1, %v816_v28 }
 0x1a5   :  { %v609_v2 = vpop.permute.xlu0 %608 }
 0x1a6   :  { %v610_v3 = vunpack.i.l.bf16 %v609_v2  ;;  %v611_v4 = vunpack.i.h.bf16 %v609_v2 }
 0x1a8   :  { %447 = vmatpush.msrb.mxu0 %v610_v3 }
 0x1aa   :  { %448 = vmatpush.msrb.mxu0 %v611_v4 }
 0x1b0   :  { %v286_v6 = vpop.f32.mrf.mxu2 }
 0x1b1   :  { %v287_v7 = vadd.f32 %v286_v6, %v87_v5 }
 0x1b3   :  { %v293_v8 = vsel %vm292_vm1, %v287_v7, -inf }
 0x1b4   :  { %294 = vmax.xlane.f32.xlu1 %v293_v8 }
 0x1b5   :  { %v614_v9 = vpop.permute.xlu0 %613 }
 0x1b6   :  { %v615_v10 = vunpack.i.l.bf16 %v614_v9  ;;  %v616_v14 = vunpack.i.h.bf16 %v614_v9 }
 0x1b8   :  { %449 = vmatpush.msrb.mxu0 %v615_v10  ;;  %v289_v13 = vpop.f32.mrf.mxu2  ;;  %v462_v10 = vperm.slane %v813_v21, 1 }
 0x1b9   :  { %v290_v15 = vadd.f32 %v289_v13, %v88_v12 }
 0x1ba   :  { %450 = vmatpush.msrb.mxu0 %v616_v14 }
 0x1bb   :  { %v296_v18 = vsel %vm292_vm1, %v290_v15, -inf }
 0x1bc   :  { %297 = vmax.xlane.f32.xlu2 %v296_v18 }
 0x1cd   :  { %193 = vrot.lane.b32.xlu1 %v809_v19, %s750_s28  ;;  %v218_v19 = vmul.f32 %v198_v0, %v819_v35 }
 0x1d4   :  { %195 = vrot.lane.b32.xlu2 %v804_v17, %s750_s28 }
 0x227   :  { %v295_v22 = vpop.xlane.xlu1 %294 }
 0x228   :  { %v299_v23 = vsub.f32 %v287_v7, %v295_v22 }
 0x22a   :  { %v301_v24 = vmul.f32 1.442695, %v299_v23 }
 0x22c   :  { %627 = vpow2.f32 %v301_v24  ;;  %v751_v24 = vmov 32.0  }
 0x22f   :  { %v298_v25 = vpop.xlane.xlu2 %297 }
 0x230   :  { %v300_v26 = vsub.f32 %v290_v15, %v298_v25 }
 0x232   :  { %v628_v27 = vpop.eup %627  ;;  %v303_v29 = vmul.f32 1.442695, %v300_v26 }
 0x233   :  { %588 = vmatmul.msk.f32.vlgmr.msra.gmra.mxu3 %vm292_vm1, %v628_v27 }
 0x234   :  { %629 = vpow2.f32 %v303_v29 }
 0x237   :  { %v196_v30 = vpop.permute.xlu2 %195 }
 0x238   :  { %v217_v17 = vmul.f32 %v196_v30, %v816_v28 }
 0x23a   :  { %v865_v31 = vpop.eup %629  ;;  %v617_v32 = vpack.i.bf16 %v217_v17, %v218_v19 }
 0x23b   :  { %589 = vmatmul.msk.f32.gmra.mxu3 %vm292_vm1, %v865_v31 }
 0x23c   :  { %618 = vrot.lane.b32.xlu2 %v617_v32, %s750_s28 }
 0x23f   :  { %v194_v33 = vpop.permute.xlu1 %193 }
 0x240   :  { %v216_v36 = vmul.f32 %v194_v33, %v819_v35  ;;  %v78_v35 = vld [vmem:[#allocation7 + $0x60] sm:$0xff] }
 0x241   :  { %481 = vmatpush.msrb.mxu1 %v78_v35 }
 0x242   :  { %v622_v37 = vpack.i.bf16 %v215_v34, %v216_v36 }
 0x243   :  { %482 = vmatpush.msrb.mxu1 %v77_v45 }
 0x244   :  { %623 = vrot.lane.b32.xlu1 %v622_v37, %s750_s28 }
 0x245   :  { %483 = vmatpush.msrb.mxu1 %v76_v46 }
 0x247   :  { %484 = vmatpush.msrb.mxu1 %v75_v48 }
 0x296   :  { %v619_v38 = vpop.permute.xlu2 %618 }
 0x297   :  { %v620_v39 = vunpack.i.l.bf16 %v619_v38  ;;  %v621_v40 = vunpack.i.h.bf16 %v619_v38 }
 0x299   :  { %451 = vmatpush.msrb.mxu0 %v620_v39 }
 0x29b   :  { %452 = vmatpush.msrb.mxu0 %v621_v40 }
 0x2b6   :  { %v332_v41 = vpop.f32.mrf.mxu3  ;;  %v624_v42 = vpop.permute.xlu1 %623 }
 0x2b7   :  { %591 = vmatmul.msk.f32.vlgmr.msrb.gmra.mxu3 %vm338_vm3, %v332_v41  ;;  %v625_v43 = vunpack.i.l.bf16 %v624_v42  ;;  %v626_v44 = vunpack.i.h.bf16 %v624_v42 }
 0x2b9   :  { %453 = vmatpush.msrb.mxu0 %v625_v43 }
 0x2bb   :  { %454 = vmatpush.msrb.mxu0 %v626_v44 }
 0x2be   :  { %v335_v28 = vpop.f32.mrf.mxu3 }
 0x2bf   :  { %592 = vmatmul.msk.f32.gmra.mxu3 %vm338_vm3, %v335_v28 }
 0x33a   :  { %v365_v47 = vpop.f32.mrf.mxu3 }
 0x33b   :  { %631 = vrcp.f32 %v365_v47  ;;  %v382_v53 = vand.u32 2147483648, %v365_v47  ;;  %v380_v55 = vand.u32 2147483647, %v365_v47  ;;  %vm376_vm5 = vweird.f32 %v365_v47 }
 0x33d   :  { %v383_v58 = vor.u32 1.1754944e-38, %v382_v53  ;;  %vm381_vm7 = vcmp.eq.f32.partialorder %v380_v55, 8.507059e+37  ;;  %v548_v55 = vperm.slane %v813_v21, 3 }
 0x341   :  { %v632_v49 = vpop.eup %631 }
 0x342   :  { %v372_v50 = vmul.f32 %v632_v49, %v365_v47  ;;  %v368_v51 = vpop.f32.mrf.mxu3  ;;  %vm377_vm4 = vweird.f32 %v632_v49 }
 0x343   :  { %633 = vrcp.f32 %v368_v51  ;;  %vm378_vm6 = vmor %vm376_vm5, %vm377_vm4  ;;  %v397_v0 = vand.u32 2147483648, %v368_v51  ;;  %v395_v2 = vand.u32 2147483647, %v368_v51  ;;  %vm391_vm9 = vweird.f32 %v368_v51 }
 0x344   :  { %v373_v52 = vsub.f32 1.0, %v372_v50  ;;  %635 = vrcp.f32 %v751_v24 }
 0x345   :  { %v398_v4 = vor.u32 1.1754944e-38, %v397_v0  ;;  %vm396_vm11 = vcmp.eq.f32.partialorder %v395_v2, 8.507059e+37 }
 0x346   :  { %v374_v54 = vmul.f32 %v632_v49, %v373_v52 }
 0x348   :  { %v375_v56 = vadd.f32 %v632_v49, %v374_v54 }
 0x349   :  { %v634_v57 = vpop.eup %633 }
 0x34a   :  { %v387_v59 = vmul.f32 %v634_v57, %v368_v51  ;;  %v379_v60 = vsel %vm378_vm6, %v632_v49, %v375_v56  ;;  %vm392_vm8 = vweird.f32 %v634_v57  ;;  %v636_v25 = vpop.eup %635  ;;  %v545_v51 = vperm.slane %v813_v21, 2 }
 0x34b   :  { %v384_v61 = vsel %vm381_vm7, %v383_v58, %v379_v60  ;;  %vm393_vm10 = vmor %vm391_vm9, %vm392_vm8  ;;  %v501_v26 = vmul.f32 32.0, %v636_v25  ;;  %vm505_vm12 = vweird.f32 %v636_v25 }
 0x34c   :  { %v388_v62 = vsub.f32 1.0, %v387_v59  ;;  %v385_v63 = vmul.f32 %v628_v27, %v384_v61 }
 0x34d   :  { %v502_v27 = vsub.f32 1.0, %v501_v26 }
 0x34e   :  { %v389_v1 = vmul.f32 %v634_v57, %v388_v62  ;;  %593 = vmatmul.msk.f32.vlgmr.msrb.gmra.mxu0 %vm292_vm1, %v385_v63 }
 0x34f   :  { %v503_v29 = vmul.f32 %v636_v25, %v502_v27 }
 0x350   :  { %v390_v3 = vadd.f32 %v634_v57, %v389_v1 }
 0x351   :  { %v504_v30 = vadd.f32 %v636_v25, %v503_v29 }
 0x352   :  { %v394_v5 = vsel %vm393_vm10, %v634_v57, %v390_v3 }
 0x353   :  { %v399_v6 = vsel %vm396_vm11, %v398_v4, %v394_v5  ;;  %v506_v19 = vsel %vm505_vm12, %v636_v25, %v504_v30 }
 0x354   :  { %v400_v7 = vmul.f32 %v865_v31, %v399_v6 }
 0x356   :  { %594 = vmatmul.msk.f32.gmra.mxu0 %vm292_vm1, %v400_v7 }
 0x3cb   :  { %v456_v8 = vpop.f32.mrf.mxu0 }
 0x3cc   :  { %595 = vmatmul.msk.f32.vlgmr.msrb.gmra.mxu1 %vm89_vm0, %v456_v8 }
 0x3d3   :  { %v459_v9 = vpop.f32.mrf.mxu0 }
 0x3d4   :  { %596 = vmatmul.msk.f32.gmra.mxu1 %vm89_vm0, %v459_v9 }
 0x449   :  { %v486_v12 = vpop.f32.mrf.mxu1 }
 0x44a   :  { %v487_v13 = vadd.f32 %v486_v12, %v462_v10 }
 0x44c   :  { %v492_v14 = vadd.f32 %v487_v13, %v797_v11 }
 0x44e   :  { %v494_v15 = vsel %vm89_vm0, %v492_v14, 0.0 }
 0x44f   :  { %495 = vadd.xlane.f32.xlu0 %v494_v15 }
 0x451   :  { %v489_v18 = vpop.f32.mrf.mxu1 }
 0x452   :  { %v490_v20 = vadd.f32 %v489_v18, %v462_v10 }
 0x454   :  { %v493_v22 = vadd.f32 %v490_v20, %v802_v16 }
 0x456   :  { %v497_v23 = vsel %vm89_vm0, %v493_v22, 0.0 }
 0x457   :  { %498 = vadd.xlane.f32.xlu2 %v497_v23 }
 0x4c2   :  { %v496_v11 = vpop.xlane.xlu0 %495 }
 0x4c3   :  { %v507_v17 = vmul.f32 %v506_v19, %v496_v11 }
 0x4c5   :  { %v509_v31 = vsub.f32 %v492_v14, %v507_v17 }
 0x4c7   :  { %v511_v32 = vmul.f32 %v509_v31, %v509_v31 }
 0x4c9   :  { %v513_v33 = vsel %vm89_vm0, %v511_v32, 0.0 }
 0x4ca   :  { %514 = vadd.xlane.f32.xlu1 %v513_v33  ;;  %v499_v16 = vpop.xlane.xlu2 %498 }
 0x4cb   :  { %v508_v34 = vmul.f32 %v506_v19, %v499_v16 }
 0x4cd   :  { %v510_v36 = vsub.f32 %v493_v22, %v508_v34 }
 0x4cf   :  { %v512_v37 = vmul.f32 %v510_v36, %v510_v36 }
 0x4d1   :  { %v516_v38 = vsel %vm89_vm0, %v512_v37, 0.0 }
 0x4d2   :  { %517 = vadd.xlane.f32.xlu0 %v516_v38 }
 0x53d   :  { %v515_v39 = vpop.xlane.xlu1 %514 }
 0x53e   :  { %v519_v40 = vmul.f32 %v515_v39, %v506_v19 }
 0x540   :  { %v521_v41 = vadd.f32 1e-05, %v519_v40 }
 0x542   :  { %637 = vrsqrt.f32 %v521_v41  ;;  %vm529_vm14 = vweird.f32 %v521_v41 }
 0x545   :  { %v518_v42 = vpop.xlane.xlu0 %517 }
 0x546   :  { %v520_v43 = vmul.f32 %v518_v42, %v506_v19 }
 0x548   :  { %v638_v44 = vpop.eup %637  ;;  %v522_v28 = vadd.f32 1e-05, %v520_v43 }
 0x549   :  { %v524_v35 = vmul.f32 %v638_v44, %v521_v41  ;;  %vm530_vm13 = vweird.f32 %v638_v44 }
 0x54a   :  { %639 = vrsqrt.f32 %v522_v28  ;;  %vm531_vm15 = vmor %vm529_vm14, %vm530_vm13  ;;  %vm539_vm2 = vweird.f32 %v522_v28 }
 0x54b   :  { %v525_v45 = vmul.f32 %v638_v44, %v524_v35 }
 0x54d   :  { %v526_v46 = vmul.f32 0.5, %v525_v45 }
 0x54f   :  { %v527_v47 = vsub.f32 1.5, %v526_v46 }
 0x550   :  { %v640_v48 = vpop.eup %639 }
 0x551   :  { %v528_v49 = vmul.f32 %v638_v44, %v527_v47  ;;  %v534_v50 = vmul.f32 %v640_v48, %v522_v28  ;;  %vm540_vm1 = vweird.f32 %v640_v48 }
 0x552   :  { %vm541_vm3 = vmor %vm539_vm2, %vm540_vm1 }
 0x553   :  { %v532_v52 = vsel %vm531_vm15, %v638_v44, %v528_v49  ;;  %v535_v53 = vmul.f32 %v640_v48, %v534_v50 }
 0x554   :  { %v543_v54 = vmul.f32 %v532_v52, %v509_v31 }
 0x555   :  { %v536_v56 = vmul.f32 0.5, %v535_v53 }
 0x556   :  { %v546_v57 = vmul.f32 %v545_v51, %v543_v54 }
 0x557   :  { %v537_v58 = vsub.f32 1.5, %v536_v56 }
 0x558   :  { %v549_v59 = vadd.f32 %v548_v55, %v546_v57 }
 0x559   :  { %v538_v60 = vmul.f32 %v640_v48, %v537_v58 }
 0x55a   :  { %551 = vst.msk [vmem:[#allocation8] sm:$0xff] %vm89_vm0, %v549_v59 }
 0x55b   :  { %v542_v61 = vsel %vm541_vm3, %v640_v48, %v538_v60 }
 0x55c   :  { %v544_v62 = vmul.f32 %v542_v61, %v510_v36 }
 0x55e   :  { %v547_v63 = vmul.f32 %v545_v51, %v544_v62 }
 0x560   :  { %v550_v21 = vadd.f32 %v548_v55, %v547_v63 }
 0x562   :  { %552 = vst.msk [vmem:[#allocation8 + $0x8] sm:$0xff] %vm89_vm0, %v550_v21 }
 0x563   :  { %565 = dma.vmem_to_hbm [thread:$0]  %s558_s30, 256, %s560_s6, [#allocation4], %s744_s20, %s744_s20, %s745_s21  }
 0x564   :  { %741 = dma.done.wait [#allocation4], 256  }
 0x565   :  { %742 = vsyncadd [#allocation4], 4294967040 }
 0x566   :  { %570 = vsyncpa [#allocation3], 1 }
 0x567   :  { %571 = vsyncpa [#allocation6], 1 }
 0x568   :  { %572 = vsyncpa [#allocation4], 1 }

</bundles_post_ra>
